<compile_context>
chip_gen: v7x
topology: tpu7x:2x2x1
jax: 0.10.0
libtpu: 0.0.40
codegen_flags: <defaults>
</compile_context>

<pallas_src>
import math

import jax
import jax.numpy as jnp
from jax import lax
from jax.experimental import pallas as pl
from jax.experimental.pallas import tpu as pltpu

_LN_EPS = 1e-5                       # torch.nn.LayerNorm default eps
_INV_SQRT2 = 1.0 / math.sqrt(2.0)


def _round_up(n, m):
    return ((n + m - 1) // m) * m


def _gelu_exact(x):
    # PyTorch nn.GELU() default: exact erf-based GELU.
    return 0.5 * x * (1.0 + lax.erf(x * _INV_SQRT2))


def _layernorm(x, gamma, beta):
    mu = jnp.mean(x, axis=-1, keepdims=True)
    xc = x - mu
    var = jnp.mean(xc * xc, axis=-1, keepdims=True)
    return xc * lax.rsqrt(var + _LN_EPS) * gamma + beta


def _head_kernel(
    x_ref,       # (Bt, D)    f32  batch tile of embeddings
    wfe_ref,     # (D, 256)   f32  receipt_feature_extractor Linear weight
    wcls_ref,    # (256, 128) f32  classifier Linear with detector branch folded in
    wout_ref,    # (128, Cp)  f32  final Linear, zero-padded to Cp lanes
    vec_ref,     # (1, 1152+Cp) f32 packed biases / LayerNorm params (128-aligned)
    out_ref,     # (Bt, Cp)   f32  logits (padded lanes)
):
    # Static, lane-aligned slices of the packed vector operand (zero-cost views).
    bfe = vec_ref[:, 0:256]
    g1 = vec_ref[:, 256:512]
    be1 = vec_ref[:, 512:768]
    bcls = vec_ref[:, 768:896]
    g2 = vec_ref[:, 896:1024]
    be2 = vec_ref[:, 1024:1152]
    bout = vec_ref[:, 1152:]

    x = x_ref[...]

    # receipt_feature_extractor: Linear -> LayerNorm -> GELU (Dropout = id)
    h = jnp.dot(x, wfe_ref[...], preferred_element_type=jnp.float32) + bfe
    base = _gelu_exact(_layernorm(h, g1, be1))                        # (Bt, 256)

    # classifier Linear(448, 128) on concat([base, detectors]) with the purely
    # linear detector branch folded into wcls/bcls at weight-prep time.
    c = jnp.dot(base, wcls_ref[...], preferred_element_type=jnp.float32) + bcls
    c = _gelu_exact(_layernorm(c, g2, be2))                           # (Bt, 128)

    # final Linear(128, num_classes) -> lane-dense padded logits
    out_ref[...] = (
        jnp.dot(c, wout_ref[...], preferred_element_type=jnp.float32) + bout
    )


def prepare_params(params):
    """One-time weight preparation (fold, concat, pad, cast). Call once per model."""
    f32 = jnp.float32
    wfe = params["wfe"].astype(f32)                                   # (D, 256)
    D = wfe.shape[0]
    C = params["wc2"].shape[1]

    # Fused detector weights: [keyword | amount | layout] -> (256, 192)
    wdet = jnp.concatenate([params["wk"], params["wa"], params["wl"]], axis=1).astype(f32)
    bdet = jnp.concatenate([params["bk"], params["ba"], params["bl"]]).astype(f32)

    # Fold the (purely linear) detector branch into the classifier Linear:
    #   concat([base, det]) @ Wc1 + bc1
    # = base @ (Wc1b + Wdet @ Wc1d) + (bdet @ Wc1d + bc1)
    wc1 = params["wc1"].astype(f32)                                   # (448, 128)
    wc1b, wc1d = wc1[:256], wc1[256:]
    wcls = wc1b + wdet @ wc1d                                         # (256, 128)
    bcls = params["bc1"].astype(f32) + bdet @ wc1d                    # (128,)

    # Lane-dense final projection: pad num_classes up to a multiple of 128.
    Cp = max(128, _round_up(C, 128))
    wout = jnp.zeros((128, Cp), f32).at[:, :C].set(params["wc2"].astype(f32))
    bout = jnp.zeros((Cp,), f32).at[:C].set(params["bc2"].astype(f32))

    # Pack all (1, N) vectors into one 128-aligned row (7 DMAs -> 1).
    vecs = jnp.concatenate(
        [
            params["bfe"].astype(f32),        # [0, 256)
            params["ln1_gamma"].astype(f32),  # [256, 512)
            params["ln1_beta"].astype(f32),   # [512, 768)
            bcls,                             # [768, 896)
            params["ln2_gamma"].astype(f32),  # [896, 1024)
            params["ln2_beta"].astype(f32),   # [1024, 1152)
            bout,                             # [1152, 1152 + Cp)
        ]
    ).reshape(1, 1152 + Cp)

    return {
        "wfe": wfe,
        "wcls": wcls,
        "wout": wout,
        "vecs": vecs,
        "input_size": D,
        "num_classes": C,
        "padded_classes": Cp,
    }


def _pick_batch_tile(B):
    # Big tiles amortize the ~0.35 us per-grid-step overhead; >= 8 rows keeps
    # the sublane dim aligned.  Cap so large batches get >= 2 grid steps
    # (shards the "parallel" axis across v7x's two TensorCores).
    bt = min(1024, _round_up(B, 8))
    if B >= 256:
        bt = min(bt, max(128, _round_up(-(-B // 2), 128)))
    return bt


def enhanced_classification_head_forward(embeddings, attention_weights, prepared):
    """embeddings: (B, input_size); attention_weights is unused by the module's forward."""
    del attention_weights  # the PyTorch forward ignores it

    B, D = embeddings.shape
    assert D == prepared["input_size"]
    C = prepared["num_classes"]
    Cp = prepared["padded_classes"]
    vec_w = 1152 + Cp
    f32 = jnp.float32

    bt = _pick_batch_tile(B)
    grid = -(-B // bt)                      # partial last tile handled by Pallas

    x = embeddings.astype(f32)

    # Rough VMEM footprint (double-buffered x/out + resident weights +
    # live intermediates), clamped to <= 32 MiB for v7x headroom.
    vmem_bytes = 4 * (
        2 * bt * (D + Cp)                                   # x / out tiles
        + 2 * (D * 256 + 256 * 128 + 128 * Cp + vec_w)      # weights
        + bt * (256 + 256 + 128 + Cp)                       # intermediates
    )
    vmem_limit = int(min(max(2 * vmem_bytes, 16 * 1024 * 1024), 32 * 1024 * 1024))

    const = lambda b: (0, 0)

    logits_p = pl.pallas_call(
        _head_kernel,
        out_shape=jax.ShapeDtypeStruct((B, Cp), f32),
        grid_spec=pltpu.PrefetchScalarGridSpec(
            num_scalar_prefetch=0,
            grid=(grid,),
            in_specs=[
                pl.BlockSpec((bt, D), lambda b: (b, 0)),
                pl.BlockSpec((D, 256), const),
                pl.BlockSpec((256, 128), const),
                pl.BlockSpec((128, Cp), const),
                pl.BlockSpec((1, vec_w), const),
            ],
            out_specs=pl.BlockSpec((bt, Cp), lambda b: (b, 0)),
        ),
        compiler_params=pltpu.CompilerParams(
            dimension_semantics=("parallel",),
            vmem_limit_bytes=vmem_limit,
        ),
    )(x, prepared["wfe"], prepared["wcls"], prepared["wout"], prepared["vecs"])

    return logits_p[:, :C]


def _reference_forward(embeddings, attention_weights, params):
    """Pure-JAX reference mirroring the PyTorch forward (eval mode)."""
    del attention_weights
    h = embeddings @ params["wfe"] + params["bfe"]
    mu = jnp.mean(h, axis=-1, keepdims=True)
    var = jnp.mean((h - mu) ** 2, axis=-1, keepdims=True)
    h = (h - mu) / jnp.sqrt(var + _LN_EPS) * params["ln1_gamma"] + params["ln1_beta"]
    base = 0.5 * h * (1.0 + lax.erf(h * _INV_SQRT2))
    kw = base @ params["wk"] + params["bk"]
    am = base @ params["wa"] + params["ba"]
    lo = base @ params["wl"] + params["bl"]
    combined = jnp.concatenate([base, kw, am, lo], axis=1)
    c = combined @ params["wc1"] + params["bc1"]
    mu = jnp.mean(c, axis=-1, keepdims=True)
    var = jnp.mean((c - mu) ** 2, axis=-1, keepdims=True)
    c = (c - mu) / jnp.sqrt(var + _LN_EPS) * params["ln2_gamma"] + params["ln2_beta"]
    c = 0.5 * c * (1.0 + lax.erf(c * _INV_SQRT2))
    return c @ params["wc2"] + params["bc2"]


if __name__ == "__main__":
    B, D_IN, NUM_CLASSES = 2, 32, 10

    key = jax.random.PRNGKey(0)
    keys = jax.random.split(key, 16)

    def _w(k, shape, fan_in):
        return jax.random.normal(k, shape, jnp.float32) / math.sqrt(fan_in)

    params = {
        "wfe": _w(keys[0], (D_IN, 256), D_IN),
        "bfe": _w(keys[1], (256,), 256),
        "ln1_gamma": 1.0 + 0.1 * jax.random.normal(keys[2], (256,), jnp.float32),
        "ln1_beta": 0.1 * jax.random.normal(keys[3], (256,), jnp.float32),
        "wk": _w(keys[4], (256, 64), 256),
        "bk": _w(keys[5], (64,), 256),
        "wa": _w(keys[6], (256, 64), 256),
        "ba": _w(keys[7], (64,), 256),
        "wl": _w(keys[8], (256, 64), 256),
        "bl": _w(keys[9], (64,), 256),
        "wc1": _w(keys[10], (448, 128), 448),
        "bc1": _w(keys[11], (128,), 448),
        "ln2_gamma": 1.0 + 0.1 * jax.random.normal(keys[12], (128,), jnp.float32),
        "ln2_beta": 0.1 * jax.random.normal(keys[13], (128,), jnp.float32),
        "wc2": _w(keys[14], (128, NUM_CLASSES), 128),
        "bc2": 0.1 * jax.random.normal(keys[15], (NUM_CLASSES,), jnp.float32),
    }

    k_x, k_aw = jax.random.split(jax.random.PRNGKey(1))
    embeddings = jax.random.normal(k_x, (B, D_IN), jnp.float32)
    attention_weights = jax.random.uniform(k_aw, (B, 8), jnp.float32)  # unused by forward

    prepared = prepare_params(params)          # one-time weight prep
    logits = enhanced_classification_head_forward(embeddings, attention_weights, prepared)
    jax.block_until_ready(logits)

    ref_logits = _reference_forward(embeddings, attention_weights, params)

    assert logits.shape == (B, NUM_CLASSES)
    assert jnp.allclose(logits, ref_logits, atol=1e-4, rtol=1e-4)

    print("KERNEL_OK")
</pallas_src>

<mosaic_0001>
module attributes {stable_mosaic.version = 11 : i64} {
  func.func @_head_kernel(%arg0: i32, %arg1: memref<8x32xf32, #tpu.memory_space<vmem>>, %arg2: memref<32x256xf32, #tpu.memory_space<vmem>>, %arg3: memref<256x128xf32, #tpu.memory_space<vmem>>, %arg4: memref<128x128xf32, #tpu.memory_space<vmem>>, %arg5: memref<1x1280xf32, #tpu.memory_space<vmem>>, %arg6: memref<8x128xf32, #tpu.memory_space<vmem>>) attributes {dimension_semantics = [#tpu.dimension_semantics<parallel>], iteration_bounds = array<i64: 1>, scalar_prefetch = 0 : i64, scratch_operands = 0 : i64, tpu.core_type = #tpu.core_type<tc>, window_params = [{transform_indices = @transform_0, window_bounds = array<i64: 8, 32>}, {pipeline_mode = #tpu.pipeline_mode<synchronous>, transform_indices = @transform_1, window_bounds = array<i64: 32, 256>}, {pipeline_mode = #tpu.pipeline_mode<synchronous>, transform_indices = @transform_2, window_bounds = array<i64: 256, 128>}, {pipeline_mode = #tpu.pipeline_mode<synchronous>, transform_indices = @transform_3, window_bounds = array<i64: 128, 128>}, {pipeline_mode = #tpu.pipeline_mode<synchronous>, transform_indices = @transform_4, window_bounds = array<i64: 1, 1280>}, {transform_indices = @transform_5, window_bounds = array<i64: 8, 128>}]} {
    %c0 = arith.constant 0 : index
    %c0_0 = arith.constant 0 : index
    %0 = vector.load %arg5[%c0, %c0_0] : memref<1x1280xf32, #tpu.memory_space<vmem>>, vector<1x256xf32>
    %c0_1 = arith.constant 0 : index
    %c256 = arith.constant 256 : index
    %1 = vector.load %arg5[%c0_1, %c256] : memref<1x1280xf32, #tpu.memory_space<vmem>>, vector<1x256xf32>
    %c0_2 = arith.constant 0 : index
    %c512 = arith.constant 512 : index
    %2 = vector.load %arg5[%c0_2, %c512] : memref<1x1280xf32, #tpu.memory_space<vmem>>, vector<1x256xf32>
    %c0_3 = arith.constant 0 : index
    %c768 = arith.constant 768 : index
    %3 = vector.load %arg5[%c0_3, %c768] : memref<1x1280xf32, #tpu.memory_space<vmem>>, vector<1x128xf32>
    %c0_4 = arith.constant 0 : index
    %c896 = arith.constant 896 : index
    %4 = vector.load %arg5[%c0_4, %c896] : memref<1x1280xf32, #tpu.memory_space<vmem>>, vector<1x128xf32>
    %c0_5 = arith.constant 0 : index
    %c1024 = arith.constant 1024 : index
    %5 = vector.load %arg5[%c0_5, %c1024] : memref<1x1280xf32, #tpu.memory_space<vmem>>, vector<1x128xf32>
    %c0_6 = arith.constant 0 : index
    %c1152 = arith.constant 1152 : index
    %6 = vector.load %arg5[%c0_6, %c1152] : memref<1x1280xf32, #tpu.memory_space<vmem>>, vector<1x128xf32>
    %c0_7 = arith.constant 0 : index
    %c0_8 = arith.constant 0 : index
    %7 = vector.load %arg1[%c0_7, %c0_8] : memref<8x32xf32, #tpu.memory_space<vmem>>, vector<8x32xf32>
    %c0_9 = arith.constant 0 : index
    %c0_10 = arith.constant 0 : index
    %8 = vector.load %arg2[%c0_9, %c0_10] : memref<32x256xf32, #tpu.memory_space<vmem>>, vector<32x256xf32>
    %cst = arith.constant dense<0.000000e+00> : vector<8x256xf32>
    %9 = tpu.matmul %7, %8, %cst {dimension_numbers = #tpu.dot_dimension_numbers<[1], [0], [0], [1], [0, 0, 1, 1], [], []>} : vector<8x32xf32>, vector<32x256xf32>, vector<8x256xf32> -> vector<8x256xf32>
    %10 = vector.broadcast %0 : vector<1x256xf32> to vector<8x256xf32>
    %11 = arith.addf %9, %10 : vector<8x256xf32>
    %cst_11 = arith.constant dense<0.000000e+00> : vector<8xf32>
    %12 = vector.multi_reduction <add>, %11, %cst_11 [1] : vector<8x256xf32> to vector<8xf32>
    %13 = vector.shape_cast %12 : vector<8xf32> to vector<8x1xf32>
    %cst_12 = arith.constant 2.560000e+02 : f32
    %14 = vector.broadcast %cst_12 : f32 to vector<8x1xf32>
    %15 = arith.divf %13, %14 : vector<8x1xf32>
    %16 = vector.broadcast %15 : vector<8x1xf32> to vector<8x256xf32>
    %17 = arith.subf %11, %16 : vector<8x256xf32>
    %18 = arith.mulf %17, %17 : vector<8x256xf32>
    %cst_13 = arith.constant dense<0.000000e+00> : vector<8xf32>
    %19 = vector.multi_reduction <add>, %18, %cst_13 [1] : vector<8x256xf32> to vector<8xf32>
    %20 = vector.shape_cast %19 : vector<8xf32> to vector<8x1xf32>
    %cst_14 = arith.constant 2.560000e+02 : f32
    %21 = vector.broadcast %cst_14 : f32 to vector<8x1xf32>
    %22 = arith.divf %20, %21 : vector<8x1xf32>
    %cst_15 = arith.constant 9.99999974E-6 : f32
    %23 = vector.broadcast %cst_15 : f32 to vector<8x1xf32>
    %24 = arith.addf %22, %23 : vector<8x1xf32>
    %25 = math.rsqrt %24 : vector<8x1xf32>
    %26 = vector.broadcast %25 : vector<8x1xf32> to vector<8x256xf32>
    %27 = arith.mulf %17, %26 : vector<8x256xf32>
    %28 = vector.broadcast %1 : vector<1x256xf32> to vector<8x256xf32>
    %29 = arith.mulf %27, %28 : vector<8x256xf32>
    %30 = vector.broadcast %2 : vector<1x256xf32> to vector<8x256xf32>
    %31 = arith.addf %29, %30 : vector<8x256xf32>
    %cst_16 = arith.constant 5.000000e-01 : f32
    %32 = vector.broadcast %cst_16 : f32 to vector<8x256xf32>
    %33 = arith.mulf %32, %31 : vector<8x256xf32>
    %cst_17 = arith.constant 0.707106769 : f32
    %34 = vector.broadcast %cst_17 : f32 to vector<8x256xf32>
    %35 = arith.mulf %31, %34 : vector<8x256xf32>
    %36 = math.erf %35 : vector<8x256xf32>
    %cst_18 = arith.constant 1.000000e+00 : f32
    %37 = vector.broadcast %cst_18 : f32 to vector<8x256xf32>
    %38 = arith.addf %37, %36 : vector<8x256xf32>
    %39 = arith.mulf %33, %38 : vector<8x256xf32>
    %c0_19 = arith.constant 0 : index
    %c0_20 = arith.constant 0 : index
    %40 = vector.load %arg3[%c0_19, %c0_20] : memref<256x128xf32, #tpu.memory_space<vmem>>, vector<256x128xf32>
    %cst_21 = arith.constant dense<0.000000e+00> : vector<8x128xf32>
    %41 = tpu.matmul %39, %40, %cst_21 {dimension_numbers = #tpu.dot_dimension_numbers<[1], [0], [0], [1], [0, 0, 1, 1], [], []>} : vector<8x256xf32>, vector<256x128xf32>, vector<8x128xf32> -> vector<8x128xf32>
    %42 = vector.broadcast %3 : vector<1x128xf32> to vector<8x128xf32>
    %43 = arith.addf %41, %42 : vector<8x128xf32>
    %cst_22 = arith.constant dense<0.000000e+00> : vector<8xf32>
    %44 = vector.multi_reduction <add>, %43, %cst_22 [1] : vector<8x128xf32> to vector<8xf32>
    %45 = vector.shape_cast %44 : vector<8xf32> to vector<8x1xf32>
    %cst_23 = arith.constant 1.280000e+02 : f32
    %46 = vector.broadcast %cst_23 : f32 to vector<8x1xf32>
    %47 = arith.divf %45, %46 : vector<8x1xf32>
    %48 = vector.broadcast %47 : vector<8x1xf32> to vector<8x128xf32>
    %49 = arith.subf %43, %48 : vector<8x128xf32>
    %50 = arith.mulf %49, %49 : vector<8x128xf32>
    %cst_24 = arith.constant dense<0.000000e+00> : vector<8xf32>
    %51 = vector.multi_reduction <add>, %50, %cst_24 [1] : vector<8x128xf32> to vector<8xf32>
    %52 = vector.shape_cast %51 : vector<8xf32> to vector<8x1xf32>
    %cst_25 = arith.constant 1.280000e+02 : f32
    %53 = vector.broadcast %cst_25 : f32 to vector<8x1xf32>
    %54 = arith.divf %52, %53 : vector<8x1xf32>
    %cst_26 = arith.constant 9.99999974E-6 : f32
    %55 = vector.broadcast %cst_26 : f32 to vector<8x1xf32>
    %56 = arith.addf %54, %55 : vector<8x1xf32>
    %57 = math.rsqrt %56 : vector<8x1xf32>
    %58 = vector.broadcast %57 : vector<8x1xf32> to vector<8x128xf32>
    %59 = arith.mulf %49, %58 : vector<8x128xf32>
    %60 = vector.broadcast %4 : vector<1x128xf32> to vector<8x128xf32>
    %61 = arith.mulf %59, %60 : vector<8x128xf32>
    %62 = vector.broadcast %5 : vector<1x128xf32> to vector<8x128xf32>
    %63 = arith.addf %61, %62 : vector<8x128xf32>
    %cst_27 = arith.constant 5.000000e-01 : f32
    %64 = vector.broadcast %cst_27 : f32 to vector<8x128xf32>
    %65 = arith.mulf %64, %63 : vector<8x128xf32>
    %cst_28 = arith.constant 0.707106769 : f32
    %66 = vector.broadcast %cst_28 : f32 to vector<8x128xf32>
    %67 = arith.mulf %63, %66 : vector<8x128xf32>
    %68 = math.erf %67 : vector<8x128xf32>
    %cst_29 = arith.constant 1.000000e+00 : f32
    %69 = vector.broadcast %cst_29 : f32 to vector<8x128xf32>
    %70 = arith.addf %69, %68 : vector<8x128xf32>
    %71 = arith.mulf %65, %70 : vector<8x128xf32>
    %c0_30 = arith.constant 0 : index
    %c0_31 = arith.constant 0 : index
    %72 = vector.load %arg4[%c0_30, %c0_31] : memref<128x128xf32, #tpu.memory_space<vmem>>, vector<128x128xf32>
    %cst_32 = arith.constant dense<0.000000e+00> : vector<8x128xf32>
    %73 = tpu.matmul %71, %72, %cst_32 {dimension_numbers = #tpu.dot_dimension_numbers<[1], [0], [0], [1], [0, 0, 1, 1], [], []>} : vector<8x128xf32>, vector<128x128xf32>, vector<8x128xf32> -> vector<8x128xf32>
    %74 = vector.broadcast %6 : vector<1x128xf32> to vector<8x128xf32>
    %75 = arith.addf %73, %74 : vector<8x128xf32>
    %c0_33 = arith.constant 0 : index
    %c0_34 = arith.constant 0 : index
    %76 = vector.load %arg6[%c0_33, %c0_34] : memref<8x128xf32, #tpu.memory_space<vmem>>, vector<8x128xf32>
    tpu.vector_store %arg6[%c0_33, %c0_34], %75 {strides = array<i32>} : memref<8x128xf32, #tpu.memory_space<vmem>>, vector<8x128xf32>,
    return
  }
  func.func @transform_0(%arg0: i32) -> (i32, i32) {
    %c0_i32 = arith.constant 0 : i32
    %c0_i32_0 = arith.constant 0 : i32
    return %arg0, %c0_i32 : i32, i32
  }
  func.func @transform_1(%arg0: i32) -> (i32, i32) {
    %c0_i32 = arith.constant 0 : i32
    %c0_i32_0 = arith.constant 0 : i32
    %c0_i32_1 = arith.constant 0 : i32
    return %c0_i32, %c0_i32_0 : i32, i32
  }
  func.func @transform_2(%arg0: i32) -> (i32, i32) {
    %c0_i32 = arith.constant 0 : i32
    %c0_i32_0 = arith.constant 0 : i32
    %c0_i32_1 = arith.constant 0 : i32
    return %c0_i32, %c0_i32_0 : i32, i32
  }
  func.func @transform_3(%arg0: i32) -> (i32, i32) {
    %c0_i32 = arith.constant 0 : i32
    %c0_i32_0 = arith.constant 0 : i32
    %c0_i32_1 = arith.constant 0 : i32
    return %c0_i32, %c0_i32_0 : i32, i32
  }
  func.func @transform_4(%arg0: i32) -> (i32, i32) {
    %c0_i32 = arith.constant 0 : i32
    %c0_i32_0 = arith.constant 0 : i32
    %c0_i32_1 = arith.constant 0 : i32
    return %c0_i32, %c0_i32_0 : i32, i32
  }
  func.func @transform_5(%arg0: i32) -> (i32, i32) {
    %c0_i32 = arith.constant 0 : i32
    %c0_i32_0 = arith.constant 0 : i32
    return %arg0, %c0_i32 : i32, i32
  }
}

</mosaic_0001>

<bundles_post_ra>
// kernel: tpu_custom_call.1
= control target key start
LH: loop header
LB: loop body
LE: loop exit
PB: predicated region body
PF: predicated region fallthrough
CT: control target
= control target key end

     0   :  { %10 = vsyncpa [#allocation3], 0  ;;  %s933_s0 = inlined_call_operand.hbm [shape: f32[2,32], index: 0, kind: input, shape index: {}]   ;;  %s934_s1 = inlined_call_operand.hbm [shape: f32[32,256], index: 1, kind: input, shape index: {}]   ;;  %s935_s2 = inlined_call_operand.hbm [shape: f32[256,128], index: 2, kind: input, shape index: {}]   ;;  %s936_s3 = inlined_call_operand.hbm [shape: f32[128,128], index: 3, kind: input, shape index: {}]   ;;  %s937_s4 = inlined_call_operand.vmem [shape: f32[1,1280], index: 4, kind: input, shape index: {}]   ;;  %s938_s5 = inlined_call_operand.hbm [shape: f32[2,128], index: 5, kind: output, shape index: {}]  }
   0x1   :  { %11 = vsyncpa [#allocation6], 0 }
   0x2   :  { %12 = vsyncpa [#allocation9], 0 }
   0x3   :  { %13 = vsyncpa [#allocation4], 0 }
   0x4   :  { %18 = vsyncadd [#allocation3], 96  ;;  %s780_s18 = smov [#allocation5]   ;;  %s662_s22 = scalar_lea.hbm %s934_s1, 1024 }
   0x5   :  { %s31_s19 = sshll.u32 %s780_s18, 4  ;;  %p663_p0 = scmp.ne.s32.totalorder %s934_s1, %s662_s22  ;;  %s32_s19 = int_to_ptr.vmem [resolvable:$true] %s31_s19 }
   0x6   :  { %p666_p1 = scmp.lt.u32.totalorder %s662_s22, %s934_s1 }
   0x8   :  { %p668_p2 = pnand %p666_p1, %p663_p0 }
   0xa   :  { %671 = shalt.err (!%p668_p2)
}
   0xb   :  { %s672_s27 = scalar_lea.vmem %s32_s19, 1024  ;;  %p677_p4 = scmp.lt.s32.totalorder %s32_s19, %s32_s19 }
   0xc   :  { %p673_p3 = scmp.ne.s32.totalorder %s32_s19, %s672_s27  ;;  %p678_p5 = scmp.lt.s32.totalorder %s672_s27, %s672_s27 }
   0xe   :  { %p679_p6 = por %p678_p5, %p677_p4 }
  0x10   :  { %p680_p7 = pnand %p679_p6, %p673_p3 }
  0x12   :  { %683 = shalt.err (!%p680_p7)
}
  0x13   :  { %s781_s28 = smov 256   ;;  %s782_s29 = smov 16  }
  0x14   :  { %37 = dma.hbm_to_vmem [thread:$0]  %s934_s1, 1024, %s32_s19, [#allocation6], %s781_s28, %s781_s28, %s782_s29  }
  0x15   :  { %s783_s7 = smov [#allocation2]   ;;  %s684_s11 = scalar_lea.hbm %s933_s0, 32 }
  0x16   :  { %s19_s8 = sshll.u32 %s783_s7, 4  ;;  %p685_p8 = scmp.ne.s32.totalorder %s933_s0, %s684_s11  ;;  %s20_s8 = int_to_ptr.vmem [resolvable:$true] %s19_s8 }
  0x17   :  { %p688_p9 = scmp.lt.u32.totalorder %s684_s11, %s933_s0 }
  0x19   :  { %p690_p10 = pnand %p688_p9, %p685_p8 }
  0x1b   :  { %693 = shalt.err (!%p690_p10)
}
  0x1c   :  { %s694_s16 = scalar_lea.vmem %s20_s8, 32  ;;  %s698_s1 = scalar_lea.vmem %s20_s8, 128 }
  0x1d   :  { %p695_p11 = scmp.ne.s32.totalorder %s20_s8, %s694_s16  ;;  %p699_p12 = scmp.lt.s32.totalorder %s20_s8, %s20_s8 }
  0x1e   :  { %p700_p13 = scmp.lt.s32.totalorder %s698_s1, %s694_s16 }
  0x20   :  { %p701_p0 = por %p700_p13, %p699_p12 }
  0x22   :  { %p702_p1 = pnand %p701_p0, %p695_p11 }
  0x24   :  { %705 = shalt.err (!%p702_p1)
}
  0x25   :  { %s784_s17 = smov 32   ;;  %s785_s18 = smov 2  }
  0x26   :  { %25 = dma.hbm_to_vmem [thread:$0]  %s933_s0, 32, %s20_s8, [#allocation3], %s784_s17, %s784_s17, %s785_s18  }
  0x27   :  { %s786_s21 = smov [#allocation7]   ;;  %s706_s25 = scalar_lea.hbm %s935_s2, 4096 }
  0x28   :  { %s43_s22 = sshll.u32 %s786_s21, 4  ;;  %p707_p2 = scmp.ne.s32.totalorder %s935_s2, %s706_s25  ;;  %s44_s22 = int_to_ptr.vmem [resolvable:$true] %s43_s22 }
  0x29   :  { %p710_p3 = scmp.lt.u32.totalorder %s706_s25, %s935_s2 }
  0x2b   :  { %p712_p4 = pnand %p710_p3, %p707_p2 }
  0x2d   :  { %715 = shalt.err (!%p712_p4)
}
  0x2e   :  { %s716_s30 = scalar_lea.vmem %s44_s22, 4096  ;;  %p721_p6 = scmp.lt.s32.totalorder %s44_s22, %s44_s22 }
  0x2f   :  { %p717_p5 = scmp.ne.s32.totalorder %s44_s22, %s716_s30  ;;  %p722_p7 = scmp.lt.s32.totalorder %s716_s30, %s716_s30 }
  0x31   :  { %p723_p8 = por %p722_p7, %p721_p6 }
  0x33   :  { %p724_p9 = pnand %p723_p8, %p717_p5 }
  0x35   :  { %727 = shalt.err (!%p724_p9)
}
  0x36   :  { %s787_s0 = smov 128   ;;  %s788_s6 = smov 8  }
  0x37   :  { %49 = dma.hbm_to_vmem [thread:$0]  %s935_s2, 4096, %s44_s22, [#allocation6], %s787_s0, %s787_s0, %s788_s6  }
  0x38   :  { %s789_s9 = smov [#allocation8]   ;;  %s728_s13 = scalar_lea.hbm %s936_s3, 2048 }
  0x39   :  { %s55_s10 = sshll.u32 %s789_s9, 4  ;;  %p729_p10 = scmp.ne.s32.totalorder %s936_s3, %s728_s13  ;;  %s56_s10 = int_to_ptr.vmem [resolvable:$true] %s55_s10 }
  0x3a   :  { %p732_p11 = scmp.lt.u32.totalorder %s728_s13, %s936_s3 }
  0x3c   :  { %p734_p12 = pnand %p732_p11, %p729_p10 }
  0x3e   :  { %737 = shalt.err (!%p734_p12)
}
  0x3f   :  { %s738_s19 = scalar_lea.vmem %s56_s10, 2048  ;;  %p743_p0 = scmp.lt.s32.totalorder %s56_s10, %s56_s10 }
  0x40   :  { %p739_p13 = scmp.ne.s32.totalorder %s56_s10, %s738_s19  ;;  %p744_p1 = scmp.lt.s32.totalorder %s738_s19, %s738_s19 }
  0x42   :  { %p745_p2 = por %p744_p1, %p743_p0 }
  0x44   :  { %p746_p3 = pnand %p745_p2, %p739_p13 }
  0x46   :  { %749 = shalt.err (!%p746_p3)
}
  0x47   :  { %61 = dma.hbm_to_vmem [thread:$0]  %s936_s3, 2048, %s56_s10, [#allocation9], %s787_s0, %s787_s0, %s788_s6  }
  0x48   :  { %772 = dma.done.wait [#allocation3], 128  }
  0x49   :  { %773 = vsyncadd [#allocation3], 4294967168 }
  0x4a   :  { %774 = dma.done.wait [#allocation6], 5120  }
  0x4b   :  { %775 = vsyncadd [#allocation6], 4294962176 }
  0x4c   :  { %776 = dma.done.wait [#allocation9], 2048  }
  0x4d   :  { %777 = vsyncadd [#allocation9], 4294965248  ;;  %v790_v0 = vmov 0.0   ;;  %v85_v1 = vld [vmem:[#allocation5 + $0x8] sm:$0xff]  ;;  %v87_v2 = vld [vmem:[#allocation5 + $0x18] sm:$0xff]  ;;  %vm103_vm0 = vcmask 261120   ;;  %v93_v14 = vlaneseq }
  0x4e   :  { %171 = vmatprep.mubr.f32.mxu0 %v790_v0  ;;  %v84_v3 = vld [vmem:[#allocation5] sm:$0xff]  ;;  %v574_v4 = vpack.c.bf16 %v87_v2, %v85_v1  ;;  %v86_v5 = vld [vmem:[#allocation5 + $0x10] sm:$0xff]  ;;  %v89_v6 = vld [vmem:[#allocation5 + $0x28] sm:$0xff]  ;;  %vm792_vm1 = vmmov 0  }
  0x4f   :  { %v91_v7 = vld [vmem:[#allocation5 + $0x38] sm:$0xff]  ;;  %v576_v8 = vpack.c.bf16 %v86_v5, %v84_v3  ;;  %v88_v10 = vld [vmem:[#allocation5 + $0x20] sm:$0xff]  ;;  %v90_v11 = vld [vmem:[#allocation5 + $0x30] sm:$0xff]  ;;  %v94_v15 = vshrl.u32 %v93_v14, 7 }
  0x50   :  { %v578_v9 = vpack.c.bf16 %v91_v7, %v89_v6  ;;  %575 = vmatprep.subr.bf16.mxu0 %v574_v4  ;;  %v580_v12 = vpack.c.bf16 %v90_v11, %v88_v10  ;;  %v83_v13 = vld [vmem:[#allocation2] sm:$0xff]  ;;  %v76_v17 = vld [vmem:[%s937_s4] sm:$0x3]  ;;  %v247_v33 = vld [vmem:[#allocation7 + $0x80] sm:$0xff] }
  0x51   :  { %577 = vmatpush1.bf16.msra.mxu0 %v576_v8  ;;  %v876_v16 = vsub.s32 0, %v94_v15  ;;  %v881_v18 = vsub.s32 1, %v94_v15  ;;  %v248_v34 = vld [vmem:[#allocation7 + $0x88] sm:$0xff]  ;;  %v231_v36 = vld [vmem:[#allocation7] sm:$0xff]  ;;  %v249_v39 = vld [vmem:[#allocation7 + $0x90] sm:$0xff] }
  0x52   :  { %579 = vmatprep.subr.bf16.mxu0 %v578_v9  ;;  %v582_v35 = vpack.c.bf16 %v248_v34, %v247_v33  ;;  %v232_v37 = vld [vmem:[#allocation7 + $0x8] sm:$0xff]  ;;  %v250_v40 = vld [vmem:[#allocation7 + $0x98] sm:$0xff]  ;;  %v233_v42 = vld [vmem:[#allocation7 + $0x10] sm:$0xff] }
  0x53   :  { %v96_v19 = vrot.slane %v76_v17, %v876_v16  ;;  %v100_v20 = vrot.slane %v76_v17, %v881_v18  ;;  %v584_v38 = vpack.c.bf16 %v232_v37, %v231_v36  ;;  %v586_v41 = vpack.c.bf16 %v250_v40, %v249_v39  ;;  %v234_v43 = vld [vmem:[#allocation7 + $0x18] sm:$0xff]  ;;  %v251_v45 = vld [vmem:[#allocation7 + $0xa0] sm:$0xff]  ;;  %v252_v46 = vld [vmem:[#allocation7 + $0xa8] sm:$0xff] }
  0x54   :  { %583 = vmatprep.subr.bf16.mxu1 %v582_v35  ;;  %v588_v44 = vpack.c.bf16 %v234_v43, %v233_v42  ;;  %v590_v47 = vpack.c.bf16 %v252_v46, %v251_v45  ;;  %v235_v48 = vld [vmem:[#allocation7 + $0x20] sm:$0xff]  ;;  %v236_v49 = vld [vmem:[#allocation7 + $0x28] sm:$0xff]  ;;  %v253_v51 = vld [vmem:[#allocation7 + $0xb0] sm:$0xff] }
  0x55   :  { %581 = vmatpush1.bf16.msra.mxu0 %v580_v12  ;;  %585 = vmatpush3.bf16.msra.mxu1 %v584_v38  ;;  %v592_v50 = vpack.c.bf16 %v236_v49, %v235_v48  ;;  %v254_v52 = vld [vmem:[#allocation7 + $0xb8] sm:$0xff]  ;;  %v237_v53 = vld [vmem:[#allocation7 + $0x30] sm:$0xff]  ;;  %v255_v56 = vld [vmem:[#allocation7 + $0xc0] sm:$0xff] }
  0x56   :  { %587 = vmatprep.subr.bf16.mxu1 %v586_v41  ;;  %v594_v54 = vpack.c.bf16 %v254_v52, %v253_v51  ;;  %v238_v55 = vld [vmem:[#allocation7 + $0x38] sm:$0xff]  ;;  %v256_v57 = vld [vmem:[#allocation7 + $0xc8] sm:$0xff]  ;;  %v239_v60 = vld [vmem:[#allocation7 + $0x40] sm:$0xff] }
  0x57   :  { %v596_v58 = vpack.c.bf16 %v238_v55, %v237_v53  ;;  %v598_v59 = vpack.c.bf16 %v256_v57, %v255_v56  ;;  %v240_v61 = vld [vmem:[#allocation7 + $0x48] sm:$0xff]  ;;  %v257_v62 = vld [vmem:[#allocation7 + $0xd0] sm:$0xff]  ;;  %v258_v63 = vld [vmem:[#allocation7 + $0xd8] sm:$0xff]  ;;  %v791_v56 = vmov 0.0|0.0  }
  0x58   :  { %482 = vmatmul.mubr.msk.f32.vlgmr.msra.gmra.mrb[0].mxu0 %vm103_vm0, %v83_v13  ;;  %v600_v1 = vpack.c.bf16 %v240_v61, %v239_v60  ;;  %v602_v2 = vpack.c.bf16 %v258_v63, %v257_v62  ;;  %v241_v3 = vld [vmem:[#allocation7 + $0x50] sm:$0xff]  ;;  %v242_v4 = vld [vmem:[#allocation7 + $0x58] sm:$0xff]  ;;  %v259_v5 = vld [vmem:[#allocation7 + $0xe0] sm:$0xff]  ;;  %614 = vmatprep.subr.bf16.mxu0 %v791_v56 }
  0x59   :  { %589 = vmatpush3.bf16.msra.mxu1 %v588_v44  ;;  %v260_v6 = vld [vmem:[#allocation7 + $0xe8] sm:$0xff]  ;;  %v604_v7 = vpack.c.bf16 %v242_v4, %v241_v3  ;;  %v243_v9 = vld [vmem:[#allocation7 + $0x60] sm:$0xff]  ;;  %v261_v11 = vld [vmem:[#allocation7 + $0xf0] sm:$0xff]  ;;  %571 = vmatprep.mubr.msk.f32.mxu0 %vm792_vm1, %v790_v0 }
  0x5a   :  { %591 = vmatprep.subr.bf16.mxu1 %v590_v47  ;;  %v606_v8 = vpack.c.bf16 %v260_v6, %v259_v5  ;;  %v244_v10 = vld [vmem:[#allocation7 + $0x68] sm:$0xff]  ;;  %v262_v12 = vld [vmem:[#allocation7 + $0xf8] sm:$0xff]  ;;  %v245_v15 = vld [vmem:[#allocation7 + $0x70] sm:$0xff] }
  0x5b   :  { %v608_v13 = vpack.c.bf16 %v244_v10, %v243_v9  ;;  %v610_v14 = vpack.c.bf16 %v262_v12, %v261_v11  ;;  %v246_v17 = vld [vmem:[#allocation7 + $0x78] sm:$0xff]  ;;  %v483_v46 = vld [vmem:[%s937_s4 + $0x6] ss:$0 sm:$0xff]  ;;  %v370_v53 = vld [vmem:[#allocation8] sm:$0xff] }
  0x5c   :  { %v372_v57 = vld [vmem:[#allocation8 + $0x10] sm:$0xff]  ;;  %v374_v60 = vld [vmem:[#allocation8 + $0x20] sm:$0xff]  ;;  %v375_v61 = vld [vmem:[#allocation8 + $0x28] sm:$0xff] }
  0x5d   :  { %593 = vmatpush3.bf16.msra.mxu1 %v592_v50  ;;  %v621_v62 = vpack.c.bf16 %v375_v61, %v374_v60  ;;  %v376_v63 = vld [vmem:[#allocation8 + $0x30] sm:$0xff]  ;;  %v378_v3 = vld [vmem:[#allocation8 + $0x40] sm:$0xff]  ;;  %v379_v4 = vld [vmem:[#allocation8 + $0x48] sm:$0xff] }
  0x5e   :  { %595 = vmatprep.subr.bf16.mxu1 %v594_v54  ;;  %v371_v54 = vld [vmem:[#allocation8 + $0x8] sm:$0xff]  ;;  %v627_v5 = vpack.c.bf16 %v379_v4, %v378_v3  ;;  %v380_v6 = vld [vmem:[#allocation8 + $0x50] sm:$0xff]  ;;  %v382_v9 = vld [vmem:[#allocation8 + $0x60] sm:$0xff] }
  0x5f   :  { %v615_v55 = vpack.c.bf16 %v371_v54, %v370_v53  ;;  %v383_v10 = vld [vmem:[#allocation8 + $0x68] sm:$0xff]  ;;  %v384_v12 = vld [vmem:[#allocation8 + $0x70] sm:$0xff] }
  0x60   :  { %v633_v11 = vpack.c.bf16 %v383_v10, %v382_v9 }
  0x61   :  { %597 = vmatpush3.bf16.msra.mxu1 %v596_v58  ;;  %616 = vmatpush3.bf16.msra.mxu0 %v615_v55  ;;  %v373_v58 = vld [vmem:[#allocation8 + $0x18] sm:$0xff] }
  0x62   :  { %599 = vmatprep.subr.bf16.mxu1 %v598_v59  ;;  %617 = vmatprep.subr.bf16.mxu0 %v791_v56  ;;  %v618_v59 = vpack.c.bf16 %v373_v58, %v372_v57 }
  0x65   :  { %601 = vmatpush3.bf16.msra.mxu1 %v600_v1  ;;  %619 = vmatpush3.bf16.msra.mxu0 %v618_v59  ;;  %v377_v1 = vld [vmem:[#allocation8 + $0x38] sm:$0xff] }
  0x66   :  { %603 = vmatprep.subr.bf16.mxu1 %v602_v2  ;;  %620 = vmatprep.subr.bf16.mxu0 %v791_v56  ;;  %v624_v2 = vpack.c.bf16 %v377_v1, %v376_v63 }
  0x69   :  { %605 = vmatpush3.bf16.msra.mxu1 %v604_v7  ;;  %622 = vmatpush3.bf16.msra.mxu0 %v621_v62  ;;  %v381_v7 = vld [vmem:[#allocation8 + $0x58] sm:$0xff] }
  0x6a   :  { %607 = vmatprep.subr.bf16.mxu1 %v606_v8  ;;  %623 = vmatprep.subr.bf16.mxu0 %v791_v56  ;;  %v630_v8 = vpack.c.bf16 %v381_v7, %v380_v6 }
  0x6d   :  { %609 = vmatpush3.bf16.msra.mxu1 %v608_v13  ;;  %625 = vmatpush3.bf16.msra.mxu0 %v624_v2  ;;  %v385_v13 = vld [vmem:[#allocation8 + $0x78] sm:$0xff] }
  0x6e   :  { %611 = vmatprep.subr.bf16.mxu1 %v610_v14  ;;  %626 = vmatprep.subr.bf16.mxu0 %v791_v56  ;;  %v636_v0 = vpack.c.bf16 %v385_v13, %v384_v12 }
  0x71   :  { %628 = vmatpush3.bf16.msra.mxu0 %v627_v5 }
  0x72   :  { %629 = vmatprep.subr.bf16.mxu0 %v791_v56 }
  0x75   :  { %631 = vmatpush3.bf16.msra.mxu0 %v630_v8 }
  0x76   :  { %632 = vmatprep.subr.bf16.mxu0 %v791_v56 }
  0x79   :  { %634 = vmatpush3.bf16.msra.mxu0 %v633_v11 }
  0x7a   :  { %635 = vmatprep.subr.bf16.mxu0 %v791_v56 }
  0x7d   :  { %637 = vmatpush3.bf16.msra.mxu0 %v636_v0 }
 0x12b   :  { %v173_v21 = vpop.f32.mrb[0].mxu0 }
 0x12c   :  { %v174_v22 = vadd.f32 %v173_v21, %v96_v19  ;;  %v175_v23 = vpop.f32.mrb[1].mxu0  ;;  %v612_v19 = vpack.c.bf16 %v246_v17, %v245_v15 }
 0x12d   :  { %v176_v24 = vadd.f32 %v175_v23, %v100_v20  ;;  %v77_v23 = vld [vmem:[%s937_s4 + $0x2] sm:$0x3] }
 0x12e   :  { %613 = vmatpush3.bf16.msra.mxu1 %v612_v19 }
 0x12f   :  { %v178_v25 = vadd.f32 %v176_v24, %v174_v22 }
 0x131   :  { %179 = vadd.xlane.f32.xlu0 %v178_v25  ;;  %v199_v25 = vrot.slane %v77_v23, %v876_v16 }
 0x1be   :  { %v180_v26 = vpop.xlane.xlu0 %179 }
 0x1bf   :  { %v182_v27 = vmul.f32 0.00390625, %v180_v26  ;;  %v203_v26 = vrot.slane %v77_v23, %v881_v18 }
 0x1c1   :  { %v885_v28 = vsub.f32 %v174_v22, %v182_v27  ;;  %v887_v29 = vsub.f32 %v176_v24, %v182_v27  ;;  %v78_v24 = vld [vmem:[%s937_s4 + $0x4] sm:$0x3] }
 0x1c2   :  { %v216_v33 = vrot.slane %v78_v24, %v881_v18 }
 0x1c3   :  { %v185_v30 = vmul.f32 %v885_v28, %v885_v28  ;;  %v186_v31 = vmul.f32 %v887_v29, %v887_v29 }
 0x1c5   :  { %v187_v32 = vadd.f32 %v186_v31, %v185_v30 }
 0x1c7   :  { %188 = vadd.xlane.f32.xlu0 %v187_v32  ;;  %v212_v32 = vrot.slane %v78_v24, %v876_v16 }
 0x254   :  { %v189_v20 = vpop.xlane.xlu0 %188 }
 0x255   :  { %v190_v21 = vmul.f32 0.00390625, %v189_v20  ;;  %v484_v20 = vld [vmem:[%s937_s4 + $0x7] ss:$0 sm:$0xff] }
 0x257   :  { %v191_v22 = vadd.f32 1e-05, %v190_v21 }
 0x259   :  { %652 = vrsqrt.f32 %v191_v22  ;;  %v485_v22 = vld [vmem:[%s937_s4 + $0x8] ss:$0 sm:$0xff] }
 0x263   :  { %v653_v27 = vpop.eup %652 }
 0x264   :  { %v193_v30 = vmul.f32 %v653_v27, %v885_v28  ;;  %v194_v31 = vmul.f32 %v653_v27, %v887_v29 }
 0x266   :  { %v207_v34 = vmul.f32 %v203_v26, %v194_v31  ;;  %v206_v35 = vmul.f32 %v199_v25, %v193_v30 }
 0x268   :  { %v220_v36 = vadd.f32 %v216_v33, %v207_v34  ;;  %v219_v37 = vadd.f32 %v212_v32, %v206_v35  ;;  %v486_v32 = vld [vmem:[%s937_s4 + $0x9] ss:$0 sm:$0xff] }
 0x26a   :  { %v224_v38 = vmul.f32 0.70710677, %v220_v36  ;;  %v223_v39 = vmul.f32 0.70710677, %v219_v37  ;;  %v222_v42 = vmul.f32 0.5, %v220_v36  ;;  %v221_v44 = vmul.f32 0.5, %v219_v37 }
 0x26c   :  { %654 = verf.f32 %v224_v38 }
 0x26d   :  { %656 = verf.f32 %v223_v39 }
 0x276   :  { %v655_v40 = vpop.eup %654 }
 0x277   :  { %v657_v41 = vpop.eup %656  ;;  %v228_v43 = vadd.f32 1.0, %v655_v40 }
 0x278   :  { %v227_v28 = vadd.f32 1.0, %v657_v41 }
 0x279   :  { %v230_v45 = vmul.f32 %v228_v43, %v222_v42 }
 0x27a   :  { %v229_v29 = vmul.f32 %v227_v28, %v221_v44 }
 0x27b   :  { %333 = vmatprep.mubr.f32.mxu1 %v230_v45 }
 0x27c   :  { %334 = vmatmul.mubr.f32.vlgmr.msra.gmra.mrb[0].mxu1 %v229_v29 }
 0x34f   :  { %v519_v16 = vpop.f32.mrb[0].mxu1 }
 0x350   :  { %v520_v18 = vpop.f32.mrb[1].mxu1 }
 0x351   :  { %v521_v47 = vadd.f32 %v520_v18, %v519_v16 }
 0x353   :  { %v336_v48 = vadd.f32 %v521_v47, %v483_v46 }
 0x355   :  { %339 = vadd.xlane.f32.xlu1 %v336_v48 }
 0x3e2   :  { %v340_v49 = vpop.xlane.xlu1 %339 }
 0x3e3   :  { %v342_v50 = vmul.f32 0.0078125, %v340_v49 }
 0x3e5   :  { %v343_v51 = vsub.f32 %v336_v48, %v342_v50 }
 0x3e7   :  { %v344_v52 = vmul.f32 %v343_v51, %v343_v51 }
 0x3e9   :  { %345 = vadd.xlane.f32.xlu1 %v344_v52 }
 0x476   :  { %v346_v14 = vpop.xlane.xlu1 %345 }
 0x477   :  { %v347_v15 = vmul.f32 0.0078125, %v346_v14 }
 0x479   :  { %v348_v17 = vadd.f32 1e-05, %v347_v15 }
 0x47b   :  { %658 = vrsqrt.f32 %v348_v17 }
 0x485   :  { %v659_v19 = vpop.eup %658 }
 0x486   :  { %v350_v21 = vmul.f32 %v659_v19, %v343_v51 }
 0x488   :  { %v357_v23 = vmul.f32 %v484_v20, %v350_v21 }
 0x48a   :  { %v364_v24 = vadd.f32 %v485_v22, %v357_v23 }
 0x48c   :  { %v366_v25 = vmul.f32 0.70710677, %v364_v24  ;;  %v365_v27 = vmul.f32 0.5, %v364_v24 }
 0x48e   :  { %660 = verf.f32 %v366_v25 }
 0x498   :  { %v661_v26 = vpop.eup %660 }
 0x499   :  { %v368_v30 = vadd.f32 1.0, %v661_v26 }
 0x49b   :  { %v369_v31 = vmul.f32 %v368_v30, %v365_v27 }
 0x49d   :  { %572 = vmatmul.mubr.f32.vlgmr.msra.gmra.mrb[2].mxu0 %v369_v31 }
 0x570   :  { %v458_v33 = vpop.f32.mrb[2].mxu0 }
 0x571   :  { %v459_v34 = vadd.f32 %v486_v32, %v458_v33  ;;  %v573_v35 = vpop.f32.mrb[3].mxu0 }
 0x573   :  { %462 = vst [vmem:[#allocation10] sm:$0xff] %v459_v34 }
 0x574   :  { %467 = vsyncadd [#allocation4], 96  ;;  %s793_s8 = smov [#allocation10]  }
 0x575   :  { %s468_s9 = sshll.u32 %s793_s8, 4  ;;  %s469_s9 = int_to_ptr.vmem [resolvable:$true] %s468_s9 }
 0x576   :  { %s750_s10 = scalar_lea.vmem %s469_s9, 32  ;;  %s754_s11 = scalar_lea.vmem %s469_s9, 128 }
 0x577   :  { %p751_p4 = scmp.ne.s32.totalorder %s469_s9, %s750_s10  ;;  %p755_p5 = scmp.lt.s32.totalorder %s469_s9, %s469_s9 }
 0x578   :  { %p756_p6 = scmp.lt.s32.totalorder %s754_s11, %s750_s10 }
 0x57a   :  { %p757_p7 = por %p756_p6, %p755_p5 }
 0x57c   :  { %p758_p8 = pnand %p757_p7, %p751_p4 }
 0x57e   :  { %761 = shalt.err (!%p758_p8)
}
 0x57f   :  { %s762_s4 = scalar_lea.hbm %s938_s5, 32 }
 0x580   :  { %p763_p9 = scmp.ne.s32.totalorder %s938_s5, %s762_s4  ;;  %p766_p10 = scmp.lt.u32.totalorder %s762_s4, %s938_s5 }
 0x582   :  { %p768_p11 = pnand %p766_p10, %p763_p9 }
 0x584   :  { %771 = shalt.err (!%p768_p11)
}
 0x585   :  { %474 = dma.vmem_to_hbm [thread:$0]  %s469_s9, 32, %s938_s5, [#allocation4], %s784_s17, %s784_s17, %s785_s18  }
 0x586   :  { %778 = dma.done.wait [#allocation4], 128  }
 0x587   :  { %779 = vsyncadd [#allocation4], 4294967168 }
 0x588   :  { %478 = vsyncpa [#allocation3], 1 }
 0x589   :  { %479 = vsyncpa [#allocation6], 1 }
 0x58a   :  { %480 = vsyncpa [#allocation9], 1 }
 0x58b   :  { %481 = vsyncpa [#allocation4], 1 }

</bundles_post_ra>
